<compile_context>
chip_gen: v7x
topology: tpu7x:2x2x1
jax: 0.10.0
libtpu: 0.0.40
codegen_flags: <defaults>
</compile_context>

<pallas_src>
import functools

import jax
import jax.numpy as jnp
from jax.experimental import pallas as pl
from jax.experimental.pallas import tpu as pltpu

_LANE = 128
_SUB_BF16 = 16  # bf16 sublane tile


def _round_up(v, m):
    return (v + m - 1) // m * m


# ---------------------------------------------------------------------------
# Kernel
# ---------------------------------------------------------------------------
def moe_kernel(x_ref, w_ref, bg_ref, be_ref, o_ref, gate_sc, acc_sc, *,
               num_experts, gp, dp, k_tiles):
    """One grid step of the tiled dense-MoE forward.

    Grid = (batch_tile i, slab n, k-tile k); n == 0 is the gating slab,
    n == 1..E are the experts.

    x_ref  : (TB, tk)   bf16  input tile
    w_ref  : (tk, Np)   bf16  weight tile (gate slab or one expert slab)
    bg_ref : (1, Gp)    f32   gate bias (padded)
    be_ref : (Gp, Dp)   f32   expert biases, row e = bias of expert e (padded)
    o_ref  : (TB, Dp)   f32   output tile (resident across n, k)
    gate_sc: (TB, Gp)   f32   gate logits -> softmaxed gate
    acc_sc : (TB, Dp)   f32   gate-weighted output accumulator
    """
    n = pl.program_id(1)
    k = pl.program_id(2)
    x = x_ref[...]

    # ---------------- gating slab: accumulate logits, then softmax ----------
    @pl.when(n == 0)
    def _gate_phase():
        @pl.when(k == 0)
        def _init():
            gate_sc[...] = jnp.zeros_like(gate_sc)
            acc_sc[...] = jnp.zeros_like(acc_sc)

        gate_sc[...] += jnp.dot(x, w_ref[:, :gp],
                                preferred_element_type=jnp.float32)

        @pl.when(k == k_tiles - 1)
        def _softmax():
            logits = gate_sc[...] + bg_ref[...]
            lane = jax.lax.broadcasted_iota(jnp.int32, logits.shape, 1)
            logits = jnp.where(lane < num_experts, logits, -jnp.inf)
            m = jnp.max(logits, axis=-1, keepdims=True)
            p = jnp.exp(logits - m)
            gate_sc[...] = p / jnp.sum(p, axis=-1, keepdims=True)

    # ---------------- expert slabs: gate-weighted accumulation --------------
    @pl.when(n > 0)
    def _expert_phase():
        e = n - 1
        # Extract gate column e as a (TB, 1) vector (one-hot lane reduction).
        lane = jax.lax.broadcasted_iota(jnp.int32, gate_sc.shape, 1)
        g = jnp.sum(jnp.where(lane == e, gate_sc[...], 0.0),
                    axis=-1, keepdims=True)
        acc_sc[...] += g * jnp.dot(x, w_ref[:, :dp],
                                   preferred_element_type=jnp.float32)

        # Final grid step for this batch tile: add gate-weighted expert biases
        # (one tiny matmul) and store the lane-dense output tile.
        @pl.when(jnp.logical_and(n == num_experts, k == k_tiles - 1))
        def _finalize():
            bias = jnp.dot(gate_sc[...], be_ref[...],
                           preferred_element_type=jnp.float32)
            o_ref[...] = (acc_sc[...] + bias).astype(o_ref.dtype)


# ---------------------------------------------------------------------------
# One-time parameter packing (hoisted out of the per-call path)
# ---------------------------------------------------------------------------
def pack_moe_params(wg, bg, we, be, *, max_tk=512, mxu_dtype=jnp.bfloat16):
    """wg: (D_in, E); bg: (E,); we: (E, D_in, D_out); be: (E, D_out)."""
    D_in, E = wg.shape
    _, _, D_out = we.shape

    tk = min(max_tk, _round_up(D_in, _LANE))       # contraction tile
    Kp = _round_up(D_in, tk)                       # padded contraction dim
    Dp = _round_up(D_out, _LANE)                   # lane-dense expert width
    Gp = _round_up(E, _LANE)                       # lane-dense gate width
    Np = max(Dp, Gp)                               # packed slab width

    # Slab 0 = gating weights, slabs 1..E = expert weights (all zero-padded).
    w_all = jnp.zeros((E + 1, Kp, Np), jnp.float32)
    w_all = w_all.at[0, :D_in, :E].set(wg)
    w_all = w_all.at[1:, :D_in, :D_out].set(we)
    w_all = w_all.astype(mxu_dtype)

    bg_p = jnp.zeros((1, Gp), jnp.float32).at[0, :E].set(bg)
    be_p = jnp.zeros((Gp, Dp), jnp.float32).at[:E, :D_out].set(be)

    meta = dict(D_in=D_in, D_out=D_out, E=E, tk=tk, Kp=Kp, Dp=Dp, Gp=Gp, Np=Np,
                mxu_dtype=mxu_dtype)
    return (w_all, bg_p, be_p), meta


# ---------------------------------------------------------------------------
# Forward wrapper
# ---------------------------------------------------------------------------
def moe_forward_packed(x, packed, meta, *, block_b=256):
    w_all, bg_p, be_p = packed
    D_in, D_out, E = meta["D_in"], meta["D_out"], meta["E"]
    tk, Kp, Dp, Gp, Np = meta["tk"], meta["Kp"], meta["Dp"], meta["Gp"], meta["Np"]
    mxu_dtype = meta["mxu_dtype"]

    B = x.shape[0]
    # Adaptive batch tiling: pad only to the bf16 sublane tile for small B.
    tb = min(block_b, _round_up(B, _SUB_BF16))
    Bp = _round_up(B, tb)
    k_tiles = Kp // tk

    x_p = jnp.zeros((Bp, Kp), jnp.float32).at[:B, :D_in].set(x).astype(mxu_dtype)

    grid = (Bp // tb, E + 1, k_tiles)

    # Explicit VMEM budget from the actual tiles (double-buffered) + headroom.
    vmem_needed = (
        2 * tb * tk * 2            # x tile (bf16, 2 buffers)
        + 2 * tk * Np * 2          # weight tile (bf16, 2 buffers)
        + 2 * Gp * 4               # gate bias
        + 2 * Gp * Dp * 4          # expert bias matrix
        + 2 * tb * Dp * 4          # f32 output tile
        + tb * Gp * 4 + tb * Dp * 4  # scratch accumulators
    )
    vmem_limit = min(int(vmem_needed * 1.5) + (2 << 20), 100 << 20)

    kernel = functools.partial(moe_kernel, num_experts=E, gp=Gp, dp=Dp,
                               k_tiles=k_tiles)

    out_p = pl.pallas_call(
        kernel,
        out_shape=jax.ShapeDtypeStruct((Bp, Dp), jnp.float32),
        grid=grid,
        in_specs=[
            pl.BlockSpec((tb, tk), lambda i, n, k: (i, k)),        # x
            pl.BlockSpec((None, tk, Np), lambda i, n, k: (n, k, 0)),  # packed W
            pl.BlockSpec((1, Gp), lambda i, n, k: (0, 0)),         # gate bias
            pl.BlockSpec((Gp, Dp), lambda i, n, k: (0, 0)),        # expert biases
        ],
        out_specs=pl.BlockSpec((tb, Dp), lambda i, n, k: (i, 0)),
        scratch_shapes=[
            pltpu.VMEM((tb, Gp), jnp.float32),   # gate logits / softmaxed gate
            pltpu.VMEM((tb, Dp), jnp.float32),   # output accumulator
        ],
        compiler_params=pltpu.CompilerParams(
            dimension_semantics=("parallel", "arbitrary", "arbitrary"),
            vmem_limit_bytes=vmem_limit,
        ),
    )(x_p, w_all, bg_p, be_p)

    return out_p[:B, :D_out]


def moe_forward(x, wg, bg, we, be, *, block_b=256):
    """Convenience wrapper: pack (one-time cost) + run."""
    packed, meta = pack_moe_params(wg, bg, we, be)
    return moe_forward_packed(x, packed, meta, block_b=block_b)


# ---------------------------------------------------------------------------
# Reference
# ---------------------------------------------------------------------------
def moe_reference(x, wg, bg, we, be):
    gate = jax.nn.softmax(x @ wg + bg, axis=-1)                 # (B, E)
    expert_out = jnp.einsum("bd,edo->beo", x, we) + be[None]    # (B, E, D_out)
    return jnp.sum(gate[..., None] * expert_out, axis=1)        # (B, D_out)


if __name__ == "__main__":
    B, D_in, D_out, E = 8, 32, 32, 4

    key = jax.random.PRNGKey(0)
    kx, kwg, kbg, kwe, kbe = jax.random.split(key, 5)

    x = jax.random.normal(kx, (B, D_in), dtype=jnp.float32)
    wg = jax.random.normal(kwg, (D_in, E), dtype=jnp.float32) * 0.1
    bg = jax.random.normal(kbg, (E,), dtype=jnp.float32) * 0.1
    we = jax.random.normal(kwe, (E, D_in, D_out), dtype=jnp.float32) * 0.1
    be = jax.random.normal(kbe, (E, D_out), dtype=jnp.float32) * 0.1

    packed, meta = pack_moe_params(wg, bg, we, be)     # one-time pack
    out = jax.block_until_ready(moe_forward_packed(x, packed, meta))
    ref = moe_reference(x, wg, bg, we, be)

    # Tolerance accounts for bf16 MXU inputs (f32 accumulation inside).
    assert out.shape == ref.shape
    assert jnp.allclose(out, ref, atol=3e-2, rtol=3e-2), "mismatch vs reference"

    print("KERNEL_OK")
</pallas_src>

<mosaic_0001>
module attributes {stable_mosaic.version = 11 : i64} {
  func.func @moe_kernel(%arg0: i32, %arg1: i32, %arg2: i32, %arg3: memref<16x128xbf16, #tpu.memory_space<vmem>>, %arg4: memref<1x128x128xbf16, #tpu.memory_space<vmem>>, %arg5: memref<1x128xf32, #tpu.memory_space<vmem>>, %arg6: memref<128x128xf32, #tpu.memory_space<vmem>>, %arg7: memref<16x128xf32, #tpu.memory_space<vmem>>, %arg8: memref<16x128xf32, #tpu.memory_space<vmem>>, %arg9: memref<16x128xf32, #tpu.memory_space<vmem>>) attributes {dimension_semantics = [#tpu.dimension_semantics<parallel>, #tpu.dimension_semantics<arbitrary>, #tpu.dimension_semantics<arbitrary>], iteration_bounds = array<i64: 1, 5, 1>, scalar_prefetch = 0 : i64, scratch_operands = 2 : i64, tpu.core_type = #tpu.core_type<tc>, window_params = [{transform_indices = @transform_0, window_bounds = array<i64: 16, 128>}, {transform_indices = @transform_1, window_bounds = array<i64: 1, 128, 128>}, {pipeline_mode = #tpu.pipeline_mode<synchronous>, transform_indices = @transform_2, window_bounds = array<i64: 1, 128>}, {pipeline_mode = #tpu.pipeline_mode<synchronous>, transform_indices = @transform_3, window_bounds = array<i64: 128, 128>}, {transform_indices = @transform_4, window_bounds = array<i64: 16, 128>}]} {
    %c0 = arith.constant 0 : index
    %c0_0 = arith.constant 0 : index
    %0 = vector.load %arg3[%c0, %c0_0] : memref<16x128xbf16, #tpu.memory_space<vmem>>, vector<16x128xbf16>
    %c0_i32 = arith.constant 0 : i32
    %1 = arith.cmpi eq, %arg1, %c0_i32 : i32
    %2 = arith.extui %1 : i1 to i32
    %c0_i32_1 = arith.constant 0 : i32
    %3 = arith.cmpi ne, %2, %c0_i32_1 : i32
    scf.if %3 {
      %c0_i32_4 = arith.constant 0 : i32
      %7 = arith.cmpi eq, %arg2, %c0_i32_4 : i32
      %8 = arith.extui %7 : i1 to i32
      %c0_i32_5 = arith.constant 0 : i32
      %9 = arith.cmpi ne, %8, %c0_i32_5 : i32
      scf.if %9 {
        %cst_15 = arith.constant 0.000000e+00 : f32
        %19 = vector.broadcast %cst_15 : f32 to vector<16x128xf32>
        %c0_16 = arith.constant 0 : index
        %c0_17 = arith.constant 0 : index
        %20 = vector.load %arg8[%c0_16, %c0_17] : memref<16x128xf32, #tpu.memory_space<vmem>>, vector<16x128xf32>
        tpu.vector_store %arg8[%c0_16, %c0_17], %19 {strides = array<i32>} : memref<16x128xf32, #tpu.memory_space<vmem>>, vector<16x128xf32>,
        %cst_18 = arith.constant 0.000000e+00 : f32
        %21 = vector.broadcast %cst_18 : f32 to vector<16x128xf32>
        %c0_19 = arith.constant 0 : index
        %c0_20 = arith.constant 0 : index
        %22 = vector.load %arg9[%c0_19, %c0_20] : memref<16x128xf32, #tpu.memory_space<vmem>>, vector<16x128xf32>
        tpu.vector_store %arg9[%c0_19, %c0_20], %21 {strides = array<i32>} : memref<16x128xf32, #tpu.memory_space<vmem>>, vector<16x128xf32>,
      } else {
      }
      %c0_6 = arith.constant 0 : index
      %c0_7 = arith.constant 0 : index
      %10 = vector.load %arg8[%c0_6, %c0_7] : memref<16x128xf32, #tpu.memory_space<vmem>>, vector<16x128xf32>
      %c0_8 = arith.constant 0 : index
      %c0_9 = arith.constant 0 : index
      %c0_10 = arith.constant 0 : index
      %11 = vector.load %arg4[%c0_8, %c0_9, %c0_10] : memref<1x128x128xbf16, #tpu.memory_space<vmem>>, vector<1x128x128xbf16>
      %12 = vector.shape_cast %11 : vector<1x128x128xbf16> to vector<128x128xbf16>
      %cst = arith.constant dense<0.000000e+00> : vector<16x128xf32>
      %13 = tpu.matmul %0, %12, %cst {dimension_numbers = #tpu.dot_dimension_numbers<[1], [0], [0], [1], [0, 0, 1, 1], [], []>} : vector<16x128xbf16>, vector<128x128xbf16>, vector<16x128xf32> -> vector<16x128xf32>
      %14 = arith.addf %10, %13 : vector<16x128xf32>
      %c0_11 = arith.constant 0 : index
      %c0_12 = arith.constant 0 : index
      %15 = vector.load %arg8[%c0_11, %c0_12] : memref<16x128xf32, #tpu.memory_space<vmem>>, vector<16x128xf32>
      tpu.vector_store %arg8[%c0_11, %c0_12], %14 {strides = array<i32>} : memref<16x128xf32, #tpu.memory_space<vmem>>, vector<16x128xf32>,
      %c0_i32_13 = arith.constant 0 : i32
      %16 = arith.cmpi eq, %arg2, %c0_i32_13 : i32
      %17 = arith.extui %16 : i1 to i32
      %c0_i32_14 = arith.constant 0 : i32
      %18 = arith.cmpi ne, %17, %c0_i32_14 : i32
      scf.if %18 {
        %c0_15 = arith.constant 0 : index
        %c0_16 = arith.constant 0 : index
        %19 = vector.load %arg8[%c0_15, %c0_16] : memref<16x128xf32, #tpu.memory_space<vmem>>, vector<16x128xf32>
        %c0_17 = arith.constant 0 : index
        %c0_18 = arith.constant 0 : index
        %20 = vector.load %arg5[%c0_17, %c0_18] : memref<1x128xf32, #tpu.memory_space<vmem>>, vector<1x128xf32>
        %21 = vector.broadcast %20 : vector<1x128xf32> to vector<16x128xf32>
        %22 = arith.addf %19, %21 : vector<16x128xf32>
        %23 = tpu.iota {dimensions = array<i32: 1>} : vector<16x128xi32>
        %c4_i32 = arith.constant 4 : i32
        %24 = vector.broadcast %c4_i32 : i32 to vector<16x128xi32>
        %25 = arith.cmpi slt, %23, %24 : vector<16x128xi32>
        %cst_19 = arith.constant 0xFF800000 : f32
        %26 = vector.broadcast %cst_19 : f32 to vector<16x128xf32>
        %27 = arith.select %25, %22, %26 : vector<16x128xi1>, vector<16x128xf32>
        %cst_20 = arith.constant dense<0xFF800000> : vector<16xf32>
        %28 = vector.multi_reduction <maximumf>, %27, %cst_20 [1] : vector<16x128xf32> to vector<16xf32>
        %29 = vector.shape_cast %28 : vector<16xf32> to vector<16x1xf32>
        %30 = vector.broadcast %29 : vector<16x1xf32> to vector<16x128xf32>
        %31 = arith.subf %27, %30 : vector<16x128xf32>
        %32 = math.exp %31 : vector<16x128xf32>
        %cst_21 = arith.constant dense<0.000000e+00> : vector<16xf32>
        %33 = vector.multi_reduction <add>, %32, %cst_21 [1] : vector<16x128xf32> to vector<16xf32>
        %34 = vector.shape_cast %33 : vector<16xf32> to vector<16x1xf32>
        %35 = vector.broadcast %34 : vector<16x1xf32> to vector<16x128xf32>
        %36 = arith.divf %32, %35 : vector<16x128xf32>
        %c0_22 = arith.constant 0 : index
        %c0_23 = arith.constant 0 : index
        %37 = vector.load %arg8[%c0_22, %c0_23] : memref<16x128xf32, #tpu.memory_space<vmem>>, vector<16x128xf32>
        tpu.vector_store %arg8[%c0_22, %c0_23], %36 {strides = array<i32>} : memref<16x128xf32, #tpu.memory_space<vmem>>, vector<16x128xf32>,
      } else {
      }
    } else {
    }
    %c0_i32_2 = arith.constant 0 : i32
    %4 = arith.cmpi sgt, %arg1, %c0_i32_2 : i32
    %5 = arith.extui %4 : i1 to i32
    %c0_i32_3 = arith.constant 0 : i32
    %6 = arith.cmpi ne, %5, %c0_i32_3 : i32
    scf.if %6 {
      %c1_i32 = arith.constant 1 : i32
      %7 = arith.subi %arg1, %c1_i32 : i32
      %8 = tpu.iota {dimensions = array<i32: 1>} : vector<16x128xi32>
      %9 = vector.broadcast %7 : i32 to vector<16x128xi32>
      %10 = arith.cmpi eq, %8, %9 : vector<16x128xi32>
      %c0_4 = arith.constant 0 : index
      %c0_5 = arith.constant 0 : index
      %11 = vector.load %arg8[%c0_4, %c0_5] : memref<16x128xf32, #tpu.memory_space<vmem>>, vector<16x128xf32>
      %cst = arith.constant 0.000000e+00 : f32
      %12 = vector.broadcast %cst : f32 to vector<16x128xf32>
      %13 = arith.select %10, %11, %12 : vector<16x128xi1>, vector<16x128xf32>
      %cst_6 = arith.constant dense<0.000000e+00> : vector<16xf32>
      %14 = vector.multi_reduction <add>, %13, %cst_6 [1] : vector<16x128xf32> to vector<16xf32>
      %15 = vector.shape_cast %14 : vector<16xf32> to vector<16x1xf32>
      %c0_7 = arith.constant 0 : index
      %c0_8 = arith.constant 0 : index
      %16 = vector.load %arg9[%c0_7, %c0_8] : memref<16x128xf32, #tpu.memory_space<vmem>>, vector<16x128xf32>
      %c0_9 = arith.constant 0 : index
      %c0_10 = arith.constant 0 : index
      %c0_11 = arith.constant 0 : index
      %17 = vector.load %arg4[%c0_9, %c0_10, %c0_11] : memref<1x128x128xbf16, #tpu.memory_space<vmem>>, vector<1x128x128xbf16>
      %18 = vector.shape_cast %17 : vector<1x128x128xbf16> to vector<128x128xbf16>
      %cst_12 = arith.constant dense<0.000000e+00> : vector<16x128xf32>
      %19 = tpu.matmul %0, %18, %cst_12 {dimension_numbers = #tpu.dot_dimension_numbers<[1], [0], [0], [1], [0, 0, 1, 1], [], []>} : vector<16x128xbf16>, vector<128x128xbf16>, vector<16x128xf32> -> vector<16x128xf32>
      %20 = vector.broadcast %15 : vector<16x1xf32> to vector<16x128xf32>
      %21 = arith.mulf %20, %19 : vector<16x128xf32>
      %22 = arith.addf %16, %21 : vector<16x128xf32>
      %c0_13 = arith.constant 0 : index
      %c0_14 = arith.constant 0 : index
      %23 = vector.load %arg9[%c0_13, %c0_14] : memref<16x128xf32, #tpu.memory_space<vmem>>, vector<16x128xf32>
      tpu.vector_store %arg9[%c0_13, %c0_14], %22 {strides = array<i32>} : memref<16x128xf32, #tpu.memory_space<vmem>>, vector<16x128xf32>,
      %c4_i32 = arith.constant 4 : i32
      %24 = arith.cmpi eq, %arg1, %c4_i32 : i32
      %c0_i32_15 = arith.constant 0 : i32
      %25 = arith.cmpi eq, %arg2, %c0_i32_15 : i32
      %26 = arith.andi %24, %25 : i1
      %27 = arith.extui %26 : i1 to i32
      %c0_i32_16 = arith.constant 0 : i32
      %28 = arith.cmpi ne, %27, %c0_i32_16 : i32
      scf.if %28 {
        %c0_17 = arith.constant 0 : index
        %c0_18 = arith.constant 0 : index
        %29 = vector.load %arg8[%c0_17, %c0_18] : memref<16x128xf32, #tpu.memory_space<vmem>>, vector<16x128xf32>
        %c0_19 = arith.constant 0 : index
        %c0_20 = arith.constant 0 : index
        %30 = vector.load %arg6[%c0_19, %c0_20] : memref<128x128xf32, #tpu.memory_space<vmem>>, vector<128x128xf32>
        %cst_21 = arith.constant dense<0.000000e+00> : vector<16x128xf32>
        %31 = tpu.matmul %29, %30, %cst_21 {dimension_numbers = #tpu.dot_dimension_numbers<[1], [0], [0], [1], [0, 0, 1, 1], [], []>} : vector<16x128xf32>, vector<128x128xf32>, vector<16x128xf32> -> vector<16x128xf32>
        %c0_22 = arith.constant 0 : index
        %c0_23 = arith.constant 0 : index
        %32 = vector.load %arg9[%c0_22, %c0_23] : memref<16x128xf32, #tpu.memory_space<vmem>>, vector<16x128xf32>
        %33 = arith.addf %32, %31 : vector<16x128xf32>
        %c0_24 = arith.constant 0 : index
        %c0_25 = arith.constant 0 : index
        %34 = vector.load %arg7[%c0_24, %c0_25] : memref<16x128xf32, #tpu.memory_space<vmem>>, vector<16x128xf32>
        tpu.vector_store %arg7[%c0_24, %c0_25], %33 {strides = array<i32>} : memref<16x128xf32, #tpu.memory_space<vmem>>, vector<16x128xf32>,
      } else {
      }
    } else {
    }
    return
  }
  func.func @transform_0(%arg0: i32, %arg1: i32, %arg2: i32) -> (i32, i32) {
    %c0_i32 = arith.constant 0 : i32
    return %arg0, %arg2 : i32, i32
  }
  func.func @transform_1(%arg0: i32, %arg1: i32, %arg2: i32) -> (i32, i32, i32) {
    %c0_i32 = arith.constant 0 : i32
    %c0_i32_0 = arith.constant 0 : i32
    return %arg1, %arg2, %c0_i32 : i32, i32, i32
  }
  func.func @transform_2(%arg0: i32, %arg1: i32, %arg2: i32) -> (i32, i32) {
    %c0_i32 = arith.constant 0 : i32
    %c0_i32_0 = arith.constant 0 : i32
    %c0_i32_1 = arith.constant 0 : i32
    return %c0_i32, %c0_i32_0 : i32, i32
  }
  func.func @transform_3(%arg0: i32, %arg1: i32, %arg2: i32) -> (i32, i32) {
    %c0_i32 = arith.constant 0 : i32
    %c0_i32_0 = arith.constant 0 : i32
    %c0_i32_1 = arith.constant 0 : i32
    return %c0_i32, %c0_i32_0 : i32, i32
  }
  func.func @transform_4(%arg0: i32, %arg1: i32, %arg2: i32) -> (i32, i32) {
    %c0_i32 = arith.constant 0 : i32
    %c0_i32_0 = arith.constant 0 : i32
    return %arg0, %c0_i32 : i32, i32
  }
}

</mosaic_0001>

<bundles_post_ra>
// kernel: tpu_custom_call.1
= control target key start
LH: loop header
LB: loop body
LE: loop exit
PB: predicated region body
PF: predicated region fallthrough
CT: control target
= control target key end

     0   :  { %9 = vsyncpa [#allocation5], 0  ;;  %s1563_s0 = inlined_call_operand.hbm [shape: bf16[16,128], index: 0, kind: input, shape index: {}]   ;;  %s1564_s1 = inlined_call_operand.hbm [shape: bf16[5,128,128], index: 1, kind: input, shape index: {}]   ;;  %s1565_s2 = inlined_call_operand.vmem [shape: f32[1,128], index: 2, kind: input, shape index: {}]   ;;  %s1566_s3 = inlined_call_operand.hbm [shape: f32[128,128], index: 3, kind: input, shape index: {}]   ;;  %s1567_s4 = inlined_call_operand.hbm [shape: f32[16,128], index: 4, kind: output, shape index: {}]  }
   0x1   :  { %10 = vsyncpa [#allocation8], 0 }
   0x2   :  { %12 = vsyncpa [#allocation8 + $0x1], 0 }
   0x3   :  { %13 = vsyncpa [#allocation6], 0  ;;  %s1307_s15 = smov 0   ;;  %s1309_s16 = smov 0  }
   0x4   :  { %s1311_s17 = smov 0   ;;  %s1313_s18 = smov 0  }
   0x5   :  { %s1315_s19 = smov 0   ;;  %s1317_s20 = smov 0  }
   0x6 LB: > { %s1336_s21 = sadd.s32 4294967295, %s1266_s20   ;;  %p82_p0 = scmp.ne.s32.totalorder %s1254_s17, %s1250_s16  ;;  %s1266_s20 = sphi %s1317_s20, %s19_s20   ;;  %s1262_s19 = sphi %s1315_s19, %s1588_s19   ;;  %s1258_s18 = sphi %s1313_s18, %s1587_s18   ;;  %s1254_s17 = sphi %s1311_s17, %s1586_s17   ;;  %s1250_s16 = sphi %s1309_s16, %s1585_s16   ;;  %s1246_s15 = sphi %s1307_s15, %s1584_s15  }
   0x7   : > { %p83_p1 = scmp.eq.s32.totalorder %s1266_s20, 0  ;;  %p88_p2 = scmp.ne.s32.totalorder %s1250_s16, %s1246_s15 }
   0x8   : > { %p1568_p3 = scmp.eq.s32.totalorder %s1336_s21, 0  ;;  %p792_p4 = scmp.ge.s32.totalorder %s1266_s20, 1 }
   0x9   : > { %p84_p5 = por %p83_p1, %p82_p0  ;;  %p167_p6 = scmp.lt.s32.totalorder %s1266_s20, 6 }
   0xa   : > { %p1347_p7 = por %p1568_p3, %p88_p2  ;;  %s1268_s24 = smov [#allocation9]  }
   0xb   : > { %p1351_p8 = pnand %p792_p4, %p167_p6  ;;  %s199_s25 = sshll.u32 %s1268_s24, 4  ;;  %s200_s25 = int_to_ptr.vmem [resolvable:$true] %s199_s25 }
   0xc   : > { %s1572_s22 = scalar_select %p1347_p7, 1, 0 }
   0xd   : > { %s1573_s23 = scalar_select %p1351_p8, 1, 0 }
   0xe   : > { %p989_p9 = pneg %p1351_p8  ;;  %p1002_p11 = scmp.lt.s32.totalorder %s1266_s20, 5 }
   0xf   : > { %s1092_s30 = scalar_lea.hbm %s1566_s3, 2048 }
  0x10   : > { %p1359_p10 = pnand %p989_p9, %p1568_p3  ;;  %p1364_p12 = pnand %p1002_p11, %p84_p5 }
  0x11   : > { %p1093_p13 = scmp.ne.s32.totalorder %s1566_s3, %s1092_s30  ;;  %p1099_p4 = scmp.lt.u32.totalorder %s1092_s30, %s1566_s3 }
  0x12   : > { %s1575_s27 = scalar_select %p1364_p12, 1, 0 }
  0x13   : > { %p1094_p0 = pneg %p1359_p10 }
  0x15   : > { %p1095_p1 = pnand %p1094_p0, %p1093_p13 }
  0x17   : > { %p1096_p2 = pneg %p1095_p1 }
  0x19   : > { %p1101_p5 = pnand %p1099_p4, %p1096_p2 }
  0x1b   : > { %1104 = shalt.err (!%p1101_p5)
}
  0x1c   : > { %s1105_s9 = scalar_lea.vmem %s200_s25, 2048  ;;  %p1113_p3 = scmp.lt.s32.totalorder %s200_s25, %s200_s25 }
  0x1d   : > { %p1106_p6 = scmp.ne.s32.totalorder %s200_s25, %s1105_s9  ;;  %p1114_p7 = scmp.lt.s32.totalorder %s1105_s9, %s1105_s9 }
  0x1f   : > { %p1108_p9 = pnand %p1106_p6, %p1094_p0  ;;  %p1115_p8 = por %p1114_p7, %p1113_p3 }
  0x21   : > { %p1109_p11 = pneg %p1108_p9 }
  0x23   : > { %p1116_p12 = pnand %p1115_p8, %p1109_p11 }
  0x25   : > { %1119 = shalt.err (!%p1116_p12)
}
  0x26   : > { %s1269_s10 = smov 128   ;;  %s1270_s11 = smov 8  }
  0x27   : > { %995 = dma.hbm_to_vmem [thread:$0]  (!%p1359_p10), %s1566_s3, 2048, %s200_s25, [#allocation8], %s1269_s10, %s1269_s10, %s1270_s11  }
  0x28   : > { %s1271_s14 = smov [#allocation4]   ;;  %s1120_s29 = scalar_lea.hbm %s1563_s0, 128 }
  0x29   : > { %s183_s15 = sshll.u32 %s1271_s14, 4  ;;  %p1121_p3 = scmp.ne.s32.totalorder %s1563_s0, %s1120_s29  ;;  %s184_s15 = int_to_ptr.vmem [resolvable:$true] %s183_s15 }
  0x2a   : > { %p1127_p12 = scmp.lt.u32.totalorder %s1120_s29, %s1563_s0 }
  0x2b   : > { %p1123_p7 = pnand %p1121_p3, %p1094_p0 }
  0x2d   : > { %p1124_p8 = pneg %p1123_p7 }
  0x2f   : > { %p1129_p13 = pnand %p1127_p12, %p1124_p8 }
  0x31   : > { %1132 = shalt.err (!%p1129_p13)
}
  0x32   : > { %s1133_s25 = scalar_lea.vmem %s184_s15, 128  ;;  %p1141_p5 = scmp.lt.s32.totalorder %s184_s15, %s184_s15 }
  0x33   : > { %p1134_p1 = scmp.ne.s32.totalorder %s184_s15, %s1133_s25  ;;  %p1142_p6 = scmp.lt.s32.totalorder %s1133_s25, %s1133_s25 }
  0x35   : > { %p1136_p2 = pnand %p1134_p1, %p1094_p0  ;;  %p1143_p9 = por %p1142_p6, %p1141_p5 }
  0x37   : > { %p1137_p4 = pneg %p1136_p2 }
  0x39   : > { %p1144_p11 = pnand %p1143_p9, %p1137_p4 }
  0x3b   : > { %1147 = shalt.err (!%p1144_p11)
}
  0x3c   : > { %s1272_s8 = smov 64   ;;  %s1273_s9 = smov 4  }
  0x3d   : > { %992 = dma.hbm_to_vmem [thread:$0]  (!%p1359_p10), %s1563_s0, 128, %s184_s15, [#allocation5], %s1272_s8, %s1272_s8, %s1273_s9  }
  0x3e   : > { %s75_s12 = sadd.s32 1, %s1254_s17  ;;  %s213_s13 = sand.u32 1, %s1266_s20  }
  0x3f   : > { %s34_s14 = sadd.s32 1, %s1262_s19  ;;  %s215_s24 = sand.u32 1, %s1254_s17  }
  0x40   : > { %p36_p0 = scmp.ge.s32.totalorder %s34_s14, 5  ;;  %s796_s28 = sshll.u32 %s215_s24, 6 }
  0x41   : > { %s830_s29 = sshll.u32 %s1262_s19, 10  ;;  %s217_s6 = scalar_lea.vmem [#allocation7], %s796_s28 }
  0x42   : > { %s1590_s14 = smov (%p36_p0, %s34_s14), 0  ;;  %s1423_s5 = scalar_lea.hbm %s1564_s1, %s830_s29 }
  0x43   : > { %s70_s15 = ssub.s32 %s1262_s19, %s1590_s14  ;;  %s226_s7 = sshll.u32 %s217_s6, 4  ;;  %s1431_s7 = int_to_ptr.vmem [resolvable:$true] %s226_s7 }
  0x44   : > { %p1427_p10 = scmp.eq.s32.totalorder %s70_s15, 0  ;;  %s1433_s10 = scalar_lea.sflag [#allocation8], %s213_s13 }
  0x45   : > { %s1148_s11 = scalar_lea.hbm %s1423_s5, 1024  ;;  %p1577_p7 = scmp.ne.s32.totalorder %s1575_s27, 0 }
  0x46   : > { %p1149_p3 = scmp.ne.s32.totalorder %s1423_s5, %s1148_s11  ;;  %s1153_s28 = scalar_lea.hbm %s1564_s1, 5120 }
  0x47   : > { %p1150_p8 = pneg %p1577_p7  ;;  %p1154_p1 = scmp.lt.u32.totalorder %s1423_s5, %s1564_s1 }
  0x48   : > { %p1155_p2 = scmp.lt.u32.totalorder %s1153_s28, %s1148_s11  ;;  %p1157_p5 = scmp.lt.u32.totalorder %s1148_s11, %s1423_s5 }
  0x49   : > { %p1151_p12 = pnand %p1150_p8, %p1149_p3 }
  0x4a   : > { %p1156_p4 = por %p1155_p2, %p1154_p1 }
  0x4b   : > { %p1152_p13 = pneg %p1151_p12 }
  0x4c   : > { %p1158_p6 = por %p1157_p5, %p1156_p4 }
  0x4e   : > { %p1159_p9 = pnand %p1158_p6, %p1152_p13 }
  0x50   : > { %1162 = shalt.err (!%p1159_p9)
}
  0x51   : > { %s1163_s13 = scalar_lea.vmem %s1431_s7, 1024  ;;  %s1274_s15 = smov [#allocation7]  }
  0x52   : > { %p1164_p11 = scmp.ne.s32.totalorder %s1431_s7, %s1163_s13  ;;  %s1168_s6 = sshll.u32 %s1274_s15, 4  ;;  %s1169_s6 = int_to_ptr.vmem [resolvable:$false] %s1168_s6 }
  0x53   : > { %s1170_s24 = scalar_lea.vmem %s1169_s6, 2048  ;;  %p1171_p12 = scmp.lt.s32.totalorder %s1431_s7, %s1169_s6 }
  0x54   : > { %p1166_p0 = pnand %p1164_p11, %p1150_p8  ;;  %p1172_p1 = scmp.lt.s32.totalorder %s1170_s24, %s1163_s13 }
  0x56   : > { %p1167_p3 = pneg %p1166_p0  ;;  %p1173_p2 = por %p1172_p1, %p1171_p12 }
  0x58   : > { %p1174_p4 = pnand %p1173_p2, %p1167_p3 }
  0x5a   : > { %1177 = shalt.err (!%p1174_p4)
}
  0x5b   : > { %999 = dma.hbm_to_vmem [thread:$0]  (!%p1577_p7), %s1423_s5, 1024, %s1431_s7, %s1433_s10, %s1272_s8, %s1272_s8, %s1273_s9  }
  0x5c   : > { %s1469_s11 = scalar_select %p1427_p10, %s1254_s17, %s75_s12  }
  0x5d   : > { %p1578_p8 = scmp.ne.s32.totalorder %s1573_s23, 0 }
  0x5e   : > { %p1579_p13 = scmp.eq.s32.totalorder (!%p1578_p8), %s1336_s21, 0 }
  0x5f   : > { %238 = sbr.rel (%p1578_p8) target bundleno = 1166 (0x48e), region = 36 }
  0x66   : > { %1229 = dma.done.wait (%p1579_p13), [#allocation5], 128   ;;  %p1580_p5 = pmov %p1579_p13 }
  0x67   : > { %s244_s27 = sand.u32 1, %s1336_s21   ;;  %s246_s29 = sand.u32 1, %s1250_s16  }
  0x68   : > { %1231 = vsyncadd (%p1580_p5), [#allocation5], 4294967168  ;;  %s801_s28 = sshll.u32 %s246_s29, 6  ;;  %s245_s8 = scalar_lea.sflag [#allocation8], %s244_s27 }
  0x69   : > { %s1479_s9 = scalar_lea.vmem [#allocation7], %s801_s28  ;;  %p1581_p10 = scmp.ne.s32.totalorder %s1572_s22, 0 }
  0x6b   : > { %1233 = dma.done.wait (%p1581_p10), %s245_s8, 1024  }
  0x6c   : > { %1235 = vsyncadd (%p1581_p10), %s245_s8, 4294966272  ;;  %p1582_p7 = pmov %p1580_p5 }
  0x6d   : > { %p1583_p6 = pmov %p1580_p5 }
  0x6e   : > { %1237 = dma.done.wait (%p1582_p7), [#allocation8], 2048  }
  0x6f   : > { %1239 = vsyncadd (%p1583_p6), [#allocation8], 4294965248  ;;  %v1489_v0 = vld [vmem:[#allocation4] sm:$0xf]  ;;  %v1491_v1 = vld [vmem:[#allocation4 + $0x4] sm:$0xf] }
  0x70   : > { %p803_p9 = scmp.ne.s32.totalorder %s1258_s18, 0 }
  0x71   : > { %v1068_v2 = vld [vmem:[%s1479_s9] sm:$0xff] (!%p803_p9)   ;;  %v1275_v3 = vmov (!%p803_p9), 0.0   ;;  %v1069_v4 = vld [vmem:[%s1479_s9 + $0x8] sm:$0xff] (!%p803_p9)   ;;  %vm1276_vm0 = vmmov (!%p803_p9), 0   ;;  %v1070_v5 = vld [vmem:[%s1479_s9 + $0x10] sm:$0xff] (!%p803_p9)   ;;  %v804_v11 = vcombine.low (!%p803_p9), %v1489_v0, %v1491_v1  ;;  %v421_v12 = vlaneseq (!%p803_p9) }
  0x72   : > { %281 = sbr.rel (%p803_p9) target bundleno = 678 (0x2a6), region = 52  ;;  %288 = vst [vmem:[#allocation3] sm:$0xff] (!%p803_p9), %v1275_v3  ;;  %289 = vst [vmem:[#allocation3 + $0x8] sm:$0xff] (!%p803_p9), %v1275_v3  ;;  %868 = vmatprep.subr.bf16.mxu0 (!%p803_p9), %v1275_v3  ;;  %884 = vmatprep.mubr.msk.bf16.mxu0 (!%p803_p9), %vm1276_vm0, %v1275_v3  ;;  %v1071_v6 = vld [vmem:[%s1479_s9 + $0x18] sm:$0xff] (!%p803_p9)   ;;  %v1072_v7 = vld [vmem:[%s1479_s9 + $0x20] sm:$0xff] (!%p803_p9)  }
  0x73   : > { %869 = vmatpush3.bf16.msra.mxu0 (!%p803_p9), %v1068_v2  ;;  %v1073_v8 = vld [vmem:[%s1479_s9 + $0x28] sm:$0xff] (!%p803_p9)   ;;  %v1074_v9 = vld [vmem:[%s1479_s9 + $0x30] sm:$0xff] (!%p803_p9)   ;;  %v1075_v10 = vld [vmem:[%s1479_s9 + $0x38] sm:$0xff] (!%p803_p9)   ;;  %v422_v13 = vand.u32 (!%p803_p9), 127, %v421_v12 }
  0x74   : > { %870 = vmatprep.subr.bf16.mxu0 (!%p803_p9), %v1275_v3  ;;  %v813_v15 = vld [vmem:[%s1565_s2] ss:$0 sm:$0xff] (!%p803_p9) }
  0x75   : > { %vm423_vm1 = vcmp.lt.s32.totalorder (!%p803_p9), %v422_v13, 4 }
  0x77   : > { %871 = vmatpush3.bf16.msra.mxu0 (!%p803_p9), %v1069_v4 }
  0x78   : > { %872 = vmatprep.subr.bf16.mxu0 (!%p803_p9), %v1275_v3 }
  0x7b   : > { %873 = vmatpush3.bf16.msra.mxu0 %v1070_v5 }
  0x7c   : > { %874 = vmatprep.subr.bf16.mxu0 %v1275_v3 }
  0x7f   : > { %875 = vmatpush3.bf16.msra.mxu0 %v1071_v6 }
  0x80   : > { %876 = vmatprep.subr.bf16.mxu0 %v1275_v3 }
  0x83   : > { %877 = vmatpush3.bf16.msra.mxu0 %v1072_v7 }
  0x84   : > { %878 = vmatprep.subr.bf16.mxu0 %v1275_v3 }
  0x87   : > { %879 = vmatpush3.bf16.msra.mxu0 %v1073_v8 }
  0x88   : > { %880 = vmatprep.subr.bf16.mxu0 %v1275_v3 }
  0x8b   : > { %881 = vmatpush3.bf16.msra.mxu0 %v1074_v9 }
  0x8c   : > { %882 = vmatprep.subr.bf16.mxu0 %v1275_v3 }
  0x8f   : > { %883 = vmatpush3.bf16.msra.mxu0 %v1075_v10 }
  0x92   : > { %885 = vmatmul.mubr.bf16.vlgmr.msra.gmra.mrb[0].mxu0 %v804_v11 }
 0x165   : > { %v396_v14 = vpop.f32.mrb[0].mxu0 }
 0x166   : > { %v886_v16 = vpop.f32.mrb[1].mxu0  ;;  %v419_v19 = vadd.f32 %v813_v15, %v396_v14 }
 0x167   : > { %v399_v17 = vpop.f32.mrb[2].mxu0 }
 0x168   : > { %v887_v18 = vpop.f32.mrb[3].mxu0  ;;  %v424_v20 = vsel %vm423_vm1, %v419_v19, -inf  ;;  %v420_v21 = vadd.f32 %v813_v15, %v399_v17 }
 0x169   : > { %426 = vmax.xlane.f32.xlu0 %v424_v20 }
 0x16a   : > { %v425_v22 = vsel %vm423_vm1, %v420_v21, -inf }
 0x16d   : > { %428 = vmax.xlane.f32.xlu0 %v425_v22 }
 0x1f6   : > { %v427_v23 = vpop.xlane.xlu0 %426 }
 0x1f7   : > { %v430_v24 = vsub.f32 %v424_v20, %v427_v23 }
 0x1f9   : > { %v432_v25 = vmul.f32 1.442695, %v430_v24 }
 0x1fa   : > { %v429_v26 = vpop.xlane.xlu0 %428 }
 0x1fb   : > { %1076 = vpow2.f32 %v432_v25  ;;  %v431_v27 = vsub.f32 %v425_v22, %v429_v26 }
 0x1fd   : > { %v434_v28 = vmul.f32 1.442695, %v431_v27 }
 0x1ff   : > { %1078 = vpow2.f32 %v434_v28 }
 0x205   : > { %v1077_v29 = vpop.eup %1076 }
 0x206   : > { %436 = vadd.xlane.f32.xlu1 %v1077_v29 }
 0x209   : > { %v1079_v30 = vpop.eup %1078 }
 0x20a   : > { %438 = vadd.xlane.f32.xlu1 %v1079_v30 }
 0x293   : > { %v437_v31 = vpop.xlane.xlu1 %436 }
 0x294   : > { %1080 = vrcp.f32 %v437_v31 }
 0x297   : > { %v439_v32 = vpop.xlane.xlu1 %438 }
 0x298   : > { %1082 = vrcp.f32 %v439_v32 }
 0x29e   : > { %v1081_v33 = vpop.eup %1080 }
 0x29f   : > { %v441_v34 = vmul.f32 %v1081_v33, %v1077_v29 }
 0x2a1   : > { %444 = vst [vmem:[#allocation2] sm:$0xff] %v441_v34 }
 0x2a2   : > { %v1083_v35 = vpop.eup %1082 }
 0x2a3   : > { %v443_v36 = vmul.f32 %v1083_v35, %v1079_v30 }
 0x2a5   : > { %445 = vst [vmem:[#allocation2 + $0x8] sm:$0xff] %v443_v36 }
 0x2a6 PF: > { %p814_p11 = scmp.le.s32.totalorder %s1258_s18, 0 }
 0x2a7   : > { %v1084_v37 = vld [vmem:[%s1479_s9] sm:$0xff] (!%p814_p11)   ;;  %v451_v38 = vlaneseq (!%p814_p11)  ;;  %v1277_v39 = vmov (!%p814_p11), 0.0   ;;  %v1085_v40 = vld [vmem:[%s1479_s9 + $0x8] sm:$0xff] (!%p814_p11)   ;;  %vm1278_vm2 = vmmov (!%p814_p11), 0   ;;  %s815_s12 = sadd.s32 (!%p814_p11), 4294967295, %s1258_s18  ;;  %v1086_v43 = vld [vmem:[%s1479_s9 + $0x10] sm:$0xff] (!%p814_p11)   ;;  %v816_v53 = vcombine.low (!%p814_p11), %v1489_v0, %v1491_v1 }
 0x2a8   : > { %449 = sbr.rel (%p814_p11) target bundleno = 1140 (0x474), region = 64  ;;  %888 = vmatprep.subr.bf16.mxu0 (!%p814_p11), %v1277_v39  ;;  %904 = vmatprep.mubr.msk.bf16.mxu0 (!%p814_p11), %vm1278_vm2, %v1277_v39  ;;  %v453_v42 = vstv (!%p814_p11), %s815_s12  ;;  %v455_v44 = vld [vmem:[#allocation2] sm:$0xff] (!%p814_p11)  ;;  %v1088_v49 = vld [vmem:[%s1479_s9 + $0x20] sm:$0xff] (!%p814_p11)   ;;  %v1089_v50 = vld [vmem:[%s1479_s9 + $0x28] sm:$0xff] (!%p814_p11)   ;;  %p582_p0 = scmp.eq.s32.totalorder (!%p814_p11), %s1258_s18, 4 }
 0x2a9   : > { %889 = vmatpush3.bf16.msra.mxu0 (!%p814_p11), %v1084_v37  ;;  %v452_v41 = vand.u32 (!%p814_p11), 127, %v451_v38  ;;  %v1087_v47 = vld [vmem:[%s1479_s9 + $0x18] sm:$0xff] (!%p814_p11)   ;;  %v1090_v51 = vld [vmem:[%s1479_s9 + $0x30] sm:$0xff] (!%p814_p11)   ;;  %v463_v55 = vld [vmem:[#allocation3] sm:$0xff] (!%p814_p11) }
 0x2aa   : > { %890 = vmatprep.subr.bf16.mxu0 (!%p814_p11), %v1277_v39  ;;  %v1091_v52 = vld [vmem:[%s1479_s9 + $0x38] sm:$0xff] (!%p814_p11)   ;;  %v464_v61 = vld [vmem:[#allocation3 + $0x8] sm:$0xff] (!%p814_p11) }
 0x2ab   : > { %vm454_vm3 = vcmp.eq.s32.totalorder (!%p814_p11), %v452_v41, %v453_v42 }
 0x2ac   : > { %v456_v45 = vld [vmem:[#allocation2 + $0x8] sm:$0xff] (!%p814_p11)  ;;  %v457_v46 = vsel (!%p814_p11), %vm454_vm3, %v455_v44, 0.0 }
 0x2ad   : > { %891 = vmatpush3.bf16.msra.mxu0 (!%p814_p11), %v1085_v40  ;;  %459 = vadd.xlane.f32.xlu0 (!%p814_p11), %v457_v46  ;;  %v458_v48 = vsel (!%p814_p11), %vm454_vm3, %v456_v45, 0.0 }
 0x2ae   : > { %892 = vmatprep.subr.bf16.mxu0 (!%p814_p11), %v1277_v39 }
 0x2af   : > { %v590_v0 = vld [vmem:[#allocation9] sm:$0xff] (%p582_p0)  ;;  %v591_v1 = vld [vmem:[#allocation9 + $0x8] sm:$0xff] (%p582_p0)  ;;  %v592_v4 = vld [vmem:[#allocation9 + $0x10] sm:$0xff] (%p582_p0) }
 0x2b0   : > { %v943_v5 = vpack.c.bf16 (%p582_p0), %v591_v1, %v590_v0  ;;  %v593_v6 = vld [vmem:[#allocation9 + $0x18] sm:$0xff] (%p582_p0)  ;;  %v594_v8 = vld [vmem:[#allocation9 + $0x20] sm:$0xff] (%p582_p0)  ;;  %v595_v9 = vld [vmem:[#allocation9 + $0x28] sm:$0xff] (%p582_p0) }
 0x2b1   : > { %893 = vmatpush3.bf16.msra.mxu0 %v1086_v43  ;;  %461 = vadd.xlane.f32.xlu0 %v458_v48  ;;  %v947_v7 = vpack.c.bf16 (%p582_p0), %v593_v6, %v592_v4  ;;  %v951_v10 = vpack.c.bf16 (%p582_p0), %v595_v9, %v594_v8  ;;  %v588_v11 = vld [vmem:[#allocation2] sm:$0xff] (%p582_p0)  ;;  %v596_v12 = vld [vmem:[#allocation9 + $0x30] sm:$0xff] (%p582_p0)  ;;  %v598_v15 = vld [vmem:[#allocation9 + $0x40] sm:$0xff] (%p582_p0) }
 0x2b2   : > { %894 = vmatprep.subr.bf16.mxu0 %v1277_v39  ;;  %v597_v13 = vld [vmem:[#allocation9 + $0x38] sm:$0xff] (%p582_p0)  ;;  %v599_v16 = vld [vmem:[#allocation9 + $0x48] sm:$0xff] (%p582_p0)  ;;  %v600_v18 = vld [vmem:[#allocation9 + $0x50] sm:$0xff] (%p582_p0) }
 0x2b3   : > { %v955_v14 = vpack.c.bf16 (%p582_p0), %v597_v13, %v596_v12  ;;  %v959_v17 = vpack.c.bf16 (%p582_p0), %v599_v16, %v598_v15  ;;  %v601_v19 = vld [vmem:[#allocation9 + $0x58] sm:$0xff] (%p582_p0)  ;;  %v602_v21 = vld [vmem:[#allocation9 + $0x60] sm:$0xff] (%p582_p0)  ;;  %v603_v22 = vld [vmem:[#allocation9 + $0x68] sm:$0xff] (%p582_p0) }
 0x2b4   : > { %v963_v20 = vpack.c.bf16 (%p582_p0), %v601_v19, %v600_v18  ;;  %v967_v23 = vpack.c.bf16 (%p582_p0), %v603_v22, %v602_v21  ;;  %v604_v24 = vld [vmem:[#allocation9 + $0x70] sm:$0xff] (%p582_p0)  ;;  %v605_v25 = vld [vmem:[#allocation9 + $0x78] sm:$0xff] (%p582_p0)  ;;  %v589_v27 = vld [vmem:[#allocation2 + $0x8] sm:$0xff] (%p582_p0) }
 0x2b5   : > { %895 = vmatpush3.bf16.msra.mxu0 %v1087_v47  ;;  %v971_v26 = vpack.c.bf16 (%p582_p0), %v605_v25, %v604_v24 }
 0x2b6   : > { %896 = vmatprep.subr.bf16.mxu0 %v1277_v39 }
 0x2b9   : > { %897 = vmatpush3.bf16.msra.mxu0 %v1088_v49 }
 0x2ba   : > { %898 = vmatprep.subr.bf16.mxu0 %v1277_v39 }
 0x2bd   : > { %899 = vmatpush3.bf16.msra.mxu0 %v1089_v50 }
 0x2be   : > { %900 = vmatprep.subr.bf16.mxu0 %v1277_v39 }
 0x2c1   : > { %901 = vmatpush3.bf16.msra.mxu0 %v1090_v51 }
 0x2c2   : > { %902 = vmatprep.subr.bf16.mxu0 %v1277_v39 }
 0x2c5   : > { %903 = vmatpush3.bf16.msra.mxu0 %v1091_v52 }
 0x2c6   : > { %944 = vmatprep.subr.bf16.mxu0 (%p582_p0), %v943_v5 }
 0x2c8   : > { %905 = vmatmul.mubr.bf16.vlgmr.msra.gmra.mrb[0].mxu0 %v816_v53 }
 0x2c9   : > { %946 = vmatpush3.bf16.msra.mxu0 (%p582_p0), %v943_v5  ;;  %940 = vmatprep.mubr.f32.mxu0 (%p582_p0), %v588_v11 }
 0x2ca   : > { %948 = vmatprep.subr.bf16.mxu0 (%p582_p0), %v947_v7 }
 0x2cd   : > { %950 = vmatpush3.bf16.msra.mxu0 (%p582_p0), %v947_v7 }
 0x2ce   : > { %952 = vmatprep.subr.bf16.mxu0 (%p582_p0), %v951_v10 }
 0x2d1   : > { %954 = vmatpush3.bf16.msra.mxu0 (%p582_p0), %v951_v10 }
 0x2d2   : > { %956 = vmatprep.subr.bf16.mxu0 (%p582_p0), %v955_v14 }
 0x2d5   : > { %958 = vmatpush3.bf16.msra.mxu0 (%p582_p0), %v955_v14 }
 0x2d6   : > { %960 = vmatprep.subr.bf16.mxu0 (%p582_p0), %v959_v17 }
 0x2d9   : > { %962 = vmatpush3.bf16.msra.mxu0 (%p582_p0), %v959_v17 }
 0x2da   : > { %964 = vmatprep.subr.bf16.mxu0 (%p582_p0), %v963_v20 }
 0x2dd   : > { %966 = vmatpush3.bf16.msra.mxu0 (%p582_p0), %v963_v20 }
 0x2de   : > { %968 = vmatprep.subr.bf16.mxu0 (%p582_p0), %v967_v23 }
 0x2e1   : > { %970 = vmatpush3.bf16.msra.mxu0 (%p582_p0), %v967_v23 }
 0x2e2   : > { %972 = vmatprep.subr.bf16.mxu0 (%p582_p0), %v971_v26 }
 0x2e5   : > { %974 = vmatpush3.bf16.msra.mxu0 (%p582_p0), %v971_v26 }
 0x33a   : > { %v460_v54 = vpop.xlane.xlu0 %459 }
 0x33e   : > { %v462_v57 = vpop.xlane.xlu0 %461 }
 0x39b   : > { %v569_v56 = vpop.f32.mrb[0].mxu0 }
 0x39c   : > { %v576_v58 = vmul.f32 %v569_v56, %v460_v54  ;;  %v906_v59 = vpop.f32.mrb[1].mxu0  ;;  %587 = sbr.rel (!%p582_p0) target bundleno = 1140 (0x474), region = 68  ;;  %941 = vmatmul.mubr.f32.vlgmr.msra.gmra.mrb[0].mxu0 (%p582_p0), %v589_v27 }
 0x39d   : > { %v572_v60 = vpop.f32.mrb[2].mxu0 }
 0x39e   : > { %v578_v62 = vadd.f32 %v576_v58, %v463_v55  ;;  %v577_v63 = vmul.f32 %v572_v60, %v462_v57  ;;  %v907_v2 = vpop.f32.mrb[3].mxu0 }
 0x3a0   : > { %580 = vst [vmem:[#allocation3] sm:$0xff] %v578_v62  ;;  %v579_v3 = vadd.f32 %v577_v63, %v464_v61 }
 0x3a2   : > { %581 = vst [vmem:[#allocation3 + $0x8] sm:$0xff] %v579_v3 }
 0x3a7   : > { %v681_v29 = vld [vmem:[#allocation3] sm:$0xff] }
 0x3a9   : > { %v682_v28 = vld [vmem:[#allocation3 + $0x8] sm:$0xff] }
 0x46f   : > { %v942_v30 = vpop.f32.mrb[0].mxu0 }
 0x470   : > { %v684_v31 = vadd.f32 %v942_v30, %v682_v28  ;;  %v672_v32 = vpop.f32.mrb[1].mxu0 }
 0x471   : > { %v683_v33 = vadd.f32 %v681_v29, %v672_v32 }
 0x472   : > { %686 = vst [vmem:[#allocation10 + $0x8] sm:$0xff] %v684_v31 }
 0x473   : > { %685 = vst [vmem:[#allocation10] sm:$0xff] %v683_v33 }
 0x474 PF: > { %p1005_p3 = scmp.eq.s32.totalorder %s1336_s21, 4  ;;  %s1279_s18 = smov [#allocation10]  }
 0x475   : > { %s696_s5 = sshll.u32 %s1279_s18, 4  ;;  %s697_s5 = int_to_ptr.vmem [resolvable:$true] %s696_s5 }
 0x476   : > { %s1178_s7 = scalar_lea.vmem %s697_s5, 256  ;;  %p1185_p4 = scmp.lt.s32.totalorder %s697_s5, %s697_s5 }
 0x477   : > { %p1179_p12 = scmp.ne.s32.totalorder %s697_s5, %s1178_s7  ;;  %p1186_p8 = scmp.lt.s32.totalorder %s1178_s7, %s1178_s7 }
 0x479   : > { %p1180_p1 = pnand %p1179_p12, %p1005_p3  ;;  %p1187_p13 = por %p1186_p8, %p1185_p4 }
 0x47b   : > { %p1181_p2 = pneg %p1180_p1 }
 0x47d   : > { %p1188_p5 = pnand %p1187_p13, %p1181_p2 }
 0x47f   : > { %1191 = shalt.err (!%p1188_p5)
}
 0x480   : > { %s1192_s30 = scalar_lea.hbm %s1567_s4, 256 }
 0x481   : > { %p1193_p10 = scmp.ne.s32.totalorder %s1567_s4, %s1192_s30  ;;  %p1198_p9 = scmp.lt.u32.totalorder %s1192_s30, %s1567_s4 }
 0x483   : > { %p1194_p7 = pnand %p1193_p10, %p1005_p3 }
 0x485   : > { %p1195_p6 = pneg %p1194_p7 }
 0x487   : > { %p1200_p11 = pnand %p1198_p9, %p1195_p6 }
 0x489   : > { %1203 = shalt.err (!%p1200_p11)
}
 0x48a   : > { %s1280_s24 = smov 128   ;;  %s1281_s27 = smov 8  }
 0x48b   : > { %986 = dma.vmem_to_hbm [thread:$0]  (%p1005_p3), %s697_s5, 256, %s1567_s4, [#allocation6], %s1280_s24, %s1280_s24, %s1281_s27  }
 0x48c   : > { %1241 = dma.done.wait (%p1005_p3), [#allocation6], 256  }
 0x48d   : > { %1243 = vsyncadd (%p1005_p3), [#allocation6], 4294967040 }
 0x48e PF: > { %s19_s20 = sadd.s32 1, %s1266_s20   ;;  %s1584_s15 = smov %s1250_s16 }
 0x48f   : > { %p16_p0 = scmp.ge.s32.totalorder %s19_s20, 7   ;;  %s1585_s16 = smov %s1254_s17 }
 0x490   : > { %s1586_s17 = smov %s1469_s11  ;;  %s1587_s18 = smov %s1262_s19 }
 0x491   : > { %s1588_s19 = smov %s1590_s14  ;;  %18 = sbr.rel (!%p16_p0) target bundleno = 6 (0x6), region = 104 }
 0x498   :  { %712 = vsyncpa [#allocation5], 1 }
 0x499   :  { %714 = vsyncpa [#allocation5 + $0x1], 1 }
 0x49a   :  { %715 = vsyncpa [#allocation8], 1 }
 0x49b   :  { %717 = vsyncpa [#allocation8 + $0x1], 1 }
 0x49c   :  { %718 = vsyncpa [#allocation6], 1 }
 0x49d   :  { %720 = vsyncpa [#allocation6 + $0x1], 1 }

</bundles_post_ra>
